<compile_context>
chip_gen: v7x
topology: tpu7x:2x2x1
jax: 0.10.0
libtpu: 0.0.40
codegen_flags: <defaults>
</compile_context>

<pallas_src>
import functools

import jax
import jax.numpy as jnp
from jax.experimental import pallas as pl
from jax.experimental.pallas import tpu as pltpu

LN_EPS = 1e-5  # PyTorch nn.LayerNorm default


def _layernorm(x, w, b):
    """f32 LayerNorm over the last axis; w/b broadcast as [1, D]."""
    m = jnp.mean(x, axis=-1, keepdims=True)
    v = jnp.mean((x - m) ** 2, axis=-1, keepdims=True)
    return (x - m) * jax.lax.rsqrt(v + LN_EPS) * w + b


# -----------------------------------------------------------------------------
# Kernel 1: patch embedding (conv-as-matmul) + class token + pos emb + ln_pre
# -----------------------------------------------------------------------------
def patch_embed_kernel(patches_ref, wt_ref, cls_ref, pos_ref,
                       lnw_ref, lnb_ref, out_ref, buf_ref):
    N = patches_ref.shape[1]
    # bf16 operands on the MXU, f32 accumulation.
    emb = jnp.dot(patches_ref[0].astype(jnp.bfloat16), wt_ref[...],
                  preferred_element_type=jnp.float32)               # [N, D] f32
    # Build the [S, D] sequence directly in VMEM scratch (no concatenate copy).
    buf_ref[0:1, :] = cls_ref[...] + pos_ref[0:1, :]
    buf_ref[1:1 + N, :] = emb + pos_ref[1:1 + N, :]
    out_ref[0] = _layernorm(buf_ref[...], lnw_ref[...], lnb_ref[...])


def patch_embed(patches, wt_bf16, cls2d, pos, ln_w, ln_b):
    B, N, K = patches.shape
    S, D = pos.shape
    return pl.pallas_call(
        patch_embed_kernel,
        out_shape=jax.ShapeDtypeStruct((B, S, D), jnp.float32),
        grid=(B,),
        in_specs=[
            pl.BlockSpec((1, N, K), lambda b: (b, 0, 0)),
            pl.BlockSpec((K, D), lambda b: (0, 0)),
            pl.BlockSpec((1, D), lambda b: (0, 0)),
            pl.BlockSpec((S, D), lambda b: (0, 0)),
            pl.BlockSpec((1, D), lambda b: (0, 0)),
            pl.BlockSpec((1, D), lambda b: (0, 0)),
        ],
        out_specs=pl.BlockSpec((1, S, D), lambda b: (b, 0, 0)),
        scratch_shapes=[pltpu.VMEM((S, D), jnp.float32)],
        compiler_params=pltpu.CompilerParams(dimension_semantics=("parallel",)),
    )(patches, wt_bf16, cls2d, pos, ln_w, ln_b)


# -----------------------------------------------------------------------------
# Kernel 2: the full transformer stack, fused over layers.
#   grid = (B, L): B is "parallel" (megacore), L is "arbitrary" (sequential).
#   Residual activation stays in VMEM scratch across the L axis.
# -----------------------------------------------------------------------------
def transformer_kernel(x_ref, ln1w_ref, ln1b_ref,
                       wqkv_ref, bqkv_ref, wo_ref, bo_ref,
                       ln2w_ref, ln2b_ref,
                       wfc_ref, bfc_ref, wpr_ref, bpr_ref,
                       out_ref, res_ref, *, n_head):
    l = pl.program_id(1)

    @pl.when(l == 0)
    def _():
        res_ref[...] = x_ref[0]        # load residual stream once per batch elt

    x = res_ref[...]                                            # [S, D] f32
    S, D = x.shape
    dh = D // n_head
    scale = 1.0 / (dh ** 0.5)

    # ---- attention branch ---------------------------------------------------
    h = _layernorm(x, ln1w_ref[0], ln1b_ref[0]).astype(jnp.bfloat16)
    # Fused QKV projection: one LHS pass through the MXU, one weight block.
    qkv = jnp.dot(h, wqkv_ref[0],
                  preferred_element_type=jnp.float32) + bqkv_ref[0]   # [S, 3D]

    def heads(t):                                   # [S, D] -> [H, S, dh] bf16
        return t.reshape(S, n_head, dh).transpose(1, 0, 2).astype(jnp.bfloat16)

    qh = heads(qkv[:, 0:D])
    kh = heads(qkv[:, D:2 * D])
    vh = heads(qkv[:, 2 * D:3 * D])

    s = jnp.einsum("hqd,hkd->hqk", qh, kh,
                   preferred_element_type=jnp.float32) * scale        # [H, S, S]
    s = s - jnp.max(s, axis=-1, keepdims=True)
    p = jnp.exp(s)
    p = p * pl.reciprocal(jnp.sum(p, axis=-1, keepdims=True), approx=True)
    ctx = jnp.einsum("hqk,hkd->hqd", p.astype(jnp.bfloat16), vh,
                     preferred_element_type=jnp.float32)              # [H, S, dh]
    ctx = ctx.transpose(1, 0, 2).reshape(S, D)

    attn_out = jnp.dot(ctx.astype(jnp.bfloat16), wo_ref[0],
                       preferred_element_type=jnp.float32) + bo_ref[0]
    x = x + attn_out

    # ---- MLP branch (QuickGELU, f32 elementwise) ----------------------------
    h2 = _layernorm(x, ln2w_ref[0], ln2b_ref[0]).astype(jnp.bfloat16)
    f = jnp.dot(h2, wfc_ref[0],
                preferred_element_type=jnp.float32) + bfc_ref[0]      # [S, 4D]
    g = (f * jax.nn.sigmoid(1.702 * f)).astype(jnp.bfloat16)
    m = jnp.dot(g, wpr_ref[0],
                preferred_element_type=jnp.float32) + bpr_ref[0]      # [S, D]
    x = x + m

    res_ref[...] = x

    @pl.when(l == pl.num_programs(1) - 1)
    def _():
        out_ref[0] = x


def _vmem_limit_bytes(S, D):
    # Per-layer bf16 weights (qkv, out-proj, c_fc, c_proj) double-buffered
    # plus rough f32 activation tiles, with slack; clamped so we never exceed
    # v7x's 64 MiB physical VMEM.
    w_bf16 = 2 * (D * 3 * D + D * D + D * 4 * D + 4 * D * D)
    acts_f32 = 4 * (4 * S * D + S * 3 * D + S * 4 * D) + 4 * 16 * S * S
    need = 2 * w_bf16 + acts_f32 + (4 << 20)
    return int(min(max(need, 32 << 20), 64 << 20))


def transformer(x, blk, n_head):
    B, S, D = x.shape
    L = blk["w_qkv"].shape[0]

    bf16 = lambda a: a.astype(jnp.bfloat16)
    w_qkv, w_o = bf16(blk["w_qkv"]), bf16(blk["w_o"])
    w_fc, w_pr = bf16(blk["w_fc"]), bf16(blk["w_pr"])

    def per_layer(a):   # stacked [L, ...]: stream one layer's slab per l step
        return pl.BlockSpec((1,) + a.shape[1:], lambda b, l: (l, 0, 0))

    args = (x, blk["ln1_w"], blk["ln1_b"], w_qkv, blk["b_qkv"],
            w_o, blk["b_o"], blk["ln2_w"], blk["ln2_b"],
            w_fc, blk["b_fc"], w_pr, blk["b_pr"])

    in_specs = ([pl.BlockSpec((1, S, D), lambda b, l: (b, 0, 0))]
                + [per_layer(a) for a in args[1:]])

    # TODO(synk): for real CLIP widths on v7x (64 MiB VMEM), additionally tile
    # w_fc / w_pr over the MLP hidden dim with a third "arbitrary" grid axis
    # and an [S, D] accumulator scratch.
    return pl.pallas_call(
        functools.partial(transformer_kernel, n_head=n_head),
        out_shape=jax.ShapeDtypeStruct((B, S, D), jnp.float32),
        grid=(B, L),
        in_specs=in_specs,
        out_specs=pl.BlockSpec((1, S, D), lambda b, l: (b, 0, 0)),
        scratch_shapes=[pltpu.VMEM((S, D), jnp.float32)],
        compiler_params=pltpu.CompilerParams(
            dimension_semantics=("parallel", "arbitrary"),
            vmem_limit_bytes=_vmem_limit_bytes(S, D)),
    )(*args)


# -----------------------------------------------------------------------------
# Kernel 3: ln_post on the class token + output projection
# -----------------------------------------------------------------------------
def head_kernel(x0_ref, lnw_ref, lnb_ref, proj_ref, out_ref):
    h = _layernorm(x0_ref[...], lnw_ref[...], lnb_ref[...])
    out_ref[...] = jnp.dot(h.astype(jnp.bfloat16), proj_ref[...],
                           preferred_element_type=jnp.float32)


def head(x0, ln_w, ln_b, proj_bf16):
    B, D = x0.shape
    E = proj_bf16.shape[1]
    return pl.pallas_call(
        head_kernel,
        out_shape=jax.ShapeDtypeStruct((B, E), jnp.float32),
    )(x0, ln_w, ln_b, proj_bf16)


# -----------------------------------------------------------------------------
# Full forward
# -----------------------------------------------------------------------------
def visual_transformer_forward(x_nchw, params, *, patch_size, heads):
    B, C, H, W = x_nchw.shape
    p = patch_size
    gh, gw = H // p, W // p

    # conv (stride == kernel) as patch extraction + matmul (glue in plain JAX)
    patches = x_nchw.reshape(B, C, gh, p, gw, p)
    patches = patches.transpose(0, 2, 4, 1, 3, 5).reshape(B, gh * gw, C * p * p)

    conv_w = params["conv_w"]                          # [width, 3, p, p]
    width = conv_w.shape[0]
    wt = conv_w.reshape(width, -1).T.astype(jnp.bfloat16)   # [C*p*p, width]

    h = patch_embed(patches, wt, params["cls"], params["pos"],
                    params["ln_pre_w"], params["ln_pre_b"])          # [B, S, D]

    h = transformer(h, params["blocks"], heads)                      # [B, S, D]

    x0 = h[:, 0, :]                                    # class token
    return head(x0, params["ln_post_w"], params["ln_post_b"],
                params["proj"].astype(jnp.bfloat16))


# -----------------------------------------------------------------------------
# Parameter initialization (matches the PyTorch init scheme; stacked per layer)
# -----------------------------------------------------------------------------
def init_params(key, *, input_resolution, patch_size, width, layers, embed_dim):
    n_patch = (input_resolution // patch_size) ** 2
    S = n_patch + 1
    D = width
    scale = width ** -0.5
    proj_std = width ** -0.5 * (2 * layers) ** -0.5
    attn_std = width ** -0.5
    fc_std = (2 * width) ** -0.5

    state = {"key": key}

    def nrm(shp, std):
        state["key"], sub = jax.random.split(state["key"])
        return std * jax.random.normal(sub, shp, jnp.float32)

    ones2 = lambda d: jnp.ones((1, d), jnp.float32)
    zeros2 = lambda d: jnp.zeros((1, d), jnp.float32)

    blocks = {
        "ln1_w": jnp.ones((layers, 1, D), jnp.float32),
        "ln1_b": jnp.zeros((layers, 1, D), jnp.float32),
        "w_qkv": nrm((layers, D, 3 * D), attn_std),      # fused in_proj ([in, out])
        "b_qkv": jnp.zeros((layers, 1, 3 * D), jnp.float32),
        "w_o":   nrm((layers, D, D), proj_std),
        "b_o":   jnp.zeros((layers, 1, D), jnp.float32),
        "ln2_w": jnp.ones((layers, 1, D), jnp.float32),
        "ln2_b": jnp.zeros((layers, 1, D), jnp.float32),
        "w_fc":  nrm((layers, D, 4 * D), fc_std),
        "b_fc":  jnp.zeros((layers, 1, 4 * D), jnp.float32),
        "w_pr":  nrm((layers, 4 * D, D), proj_std),
        "b_pr":  jnp.zeros((layers, 1, D), jnp.float32),
    }

    return {
        "conv_w": nrm((D, 3, patch_size, patch_size), scale),
        "cls": nrm((1, D), scale),
        "pos": nrm((S, D), 0.01),
        "ln_pre_w": ones2(D), "ln_pre_b": zeros2(D),
        "blocks": blocks,
        "ln_post_w": ones2(D), "ln_post_b": zeros2(D),
        "proj": nrm((D, embed_dim), scale),
    }


if __name__ == "__main__":
    B = 2
    input_resolution, patch_size = 16, 8
    width, layers, heads, embed_dim = 32, 2, 4, 32

    key = jax.random.PRNGKey(0)
    k_param, k_x = jax.random.split(key)
    params = init_params(k_param, input_resolution=input_resolution,
                         patch_size=patch_size, width=width,
                         layers=layers, embed_dim=embed_dim)

    x = jax.random.normal(k_x, (B, 3, input_resolution, input_resolution),
                          jnp.float32)

    out = visual_transformer_forward(x, params, patch_size=patch_size,
                                     heads=heads)
    out = jax.block_until_ready(out)
    assert out.shape == (B, embed_dim), out.shape
    assert bool(jnp.all(jnp.isfinite(out)))
    print("KERNEL_OK")
</pallas_src>

<mosaic_0001>
module attributes {stable_mosaic.version = 11 : i64} {
  func.func @patch_embed_kernel(%arg0: i32, %arg1: memref<1x4x192xf32, #tpu.memory_space<vmem>>, %arg2: memref<192x32xbf16, #tpu.memory_space<vmem>>, %arg3: memref<1x32xf32, #tpu.memory_space<vmem>>, %arg4: memref<5x32xf32, #tpu.memory_space<vmem>>, %arg5: memref<1x32xf32, #tpu.memory_space<vmem>>, %arg6: memref<1x32xf32, #tpu.memory_space<vmem>>, %arg7: memref<1x5x32xf32, #tpu.memory_space<vmem>>, %arg8: memref<5x32xf32, #tpu.memory_space<vmem>>) attributes {dimension_semantics = [#tpu.dimension_semantics<parallel>], iteration_bounds = array<i64: 2>, scalar_prefetch = 0 : i64, scratch_operands = 1 : i64, tpu.core_type = #tpu.core_type<tc>, window_params = [{transform_indices = @transform_0, window_bounds = array<i64: 1, 4, 192>}, {pipeline_mode = #tpu.pipeline_mode<synchronous>, transform_indices = @transform_1, window_bounds = array<i64: 192, 32>}, {pipeline_mode = #tpu.pipeline_mode<synchronous>, transform_indices = @transform_2, window_bounds = array<i64: 1, 32>}, {pipeline_mode = #tpu.pipeline_mode<synchronous>, transform_indices = @transform_3, window_bounds = array<i64: 5, 32>}, {pipeline_mode = #tpu.pipeline_mode<synchronous>, transform_indices = @transform_4, window_bounds = array<i64: 1, 32>}, {pipeline_mode = #tpu.pipeline_mode<synchronous>, transform_indices = @transform_5, window_bounds = array<i64: 1, 32>}, {transform_indices = @transform_6, window_bounds = array<i64: 1, 5, 32>}]} {
    %c0 = arith.constant 0 : index
    %c0_0 = arith.constant 0 : index
    %c0_1 = arith.constant 0 : index
    %0 = vector.load %arg1[%c0, %c0_0, %c0_1] : memref<1x4x192xf32, #tpu.memory_space<vmem>>, vector<1x4x192xf32>
    %1 = vector.shape_cast %0 : vector<1x4x192xf32> to vector<4x192xf32>
    %2 = arith.truncf %1 : vector<4x192xf32> to vector<4x192xbf16>
    %c0_2 = arith.constant 0 : index
    %c0_3 = arith.constant 0 : index
    %3 = vector.load %arg2[%c0_2, %c0_3] : memref<192x32xbf16, #tpu.memory_space<vmem>>, vector<192x32xbf16>
    %cst = arith.constant dense<0.000000e+00> : vector<4x32xf32>
    %4 = tpu.matmul %2, %3, %cst {dimension_numbers = #tpu.dot_dimension_numbers<[1], [0], [0], [1], [0, 0, 1, 1], [], []>} : vector<4x192xbf16>, vector<192x32xbf16>, vector<4x32xf32> -> vector<4x32xf32>
    %c0_4 = arith.constant 0 : index
    %c0_5 = arith.constant 0 : index
    %5 = vector.load %arg3[%c0_4, %c0_5] : memref<1x32xf32, #tpu.memory_space<vmem>>, vector<1x32xf32>
    %c0_6 = arith.constant 0 : index
    %c0_7 = arith.constant 0 : index
    %6 = vector.load %arg4[%c0_6, %c0_7] : memref<5x32xf32, #tpu.memory_space<vmem>>, vector<1x32xf32>
    %7 = arith.addf %5, %6 : vector<1x32xf32>
    %c0_8 = arith.constant 0 : index
    %c0_9 = arith.constant 0 : index
    %8 = vector.load %arg8[%c0_8, %c0_9] : memref<5x32xf32, #tpu.memory_space<vmem>>, vector<1x32xf32>
    tpu.vector_store %arg8[%c0_8, %c0_9], %7 {strides = array<i32>} : memref<5x32xf32, #tpu.memory_space<vmem>>, vector<1x32xf32>,
    %c1 = arith.constant 1 : index
    %c0_10 = arith.constant 0 : index
    %9 = vector.load %arg4[%c1, %c0_10] : memref<5x32xf32, #tpu.memory_space<vmem>>, vector<4x32xf32>
    %10 = arith.addf %4, %9 : vector<4x32xf32>
    %c1_11 = arith.constant 1 : index
    %c0_12 = arith.constant 0 : index
    %11 = vector.load %arg8[%c1_11, %c0_12] : memref<5x32xf32, #tpu.memory_space<vmem>>, vector<4x32xf32>
    tpu.vector_store %arg8[%c1_11, %c0_12], %10 {strides = array<i32>} : memref<5x32xf32, #tpu.memory_space<vmem>>, vector<4x32xf32>,
    %c0_13 = arith.constant 0 : index
    %c0_14 = arith.constant 0 : index
    %12 = vector.load %arg8[%c0_13, %c0_14] : memref<5x32xf32, #tpu.memory_space<vmem>>, vector<5x32xf32>
    %c0_15 = arith.constant 0 : index
    %c0_16 = arith.constant 0 : index
    %13 = vector.load %arg5[%c0_15, %c0_16] : memref<1x32xf32, #tpu.memory_space<vmem>>, vector<1x32xf32>
    %c0_17 = arith.constant 0 : index
    %c0_18 = arith.constant 0 : index
    %14 = vector.load %arg6[%c0_17, %c0_18] : memref<1x32xf32, #tpu.memory_space<vmem>>, vector<1x32xf32>
    %cst_19 = arith.constant dense<0.000000e+00> : vector<5xf32>
    %15 = vector.multi_reduction <add>, %12, %cst_19 [1] : vector<5x32xf32> to vector<5xf32>
    %16 = vector.shape_cast %15 : vector<5xf32> to vector<5x1xf32>
    %cst_20 = arith.constant 3.200000e+01 : f32
    %17 = vector.broadcast %cst_20 : f32 to vector<5x1xf32>
    %18 = arith.divf %16, %17 : vector<5x1xf32>
    %19 = vector.broadcast %18 : vector<5x1xf32> to vector<5x32xf32>
    %20 = arith.subf %12, %19 : vector<5x32xf32>
    %21 = arith.mulf %20, %20 : vector<5x32xf32>
    %cst_21 = arith.constant dense<0.000000e+00> : vector<5xf32>
    %22 = vector.multi_reduction <add>, %21, %cst_21 [1] : vector<5x32xf32> to vector<5xf32>
    %23 = vector.shape_cast %22 : vector<5xf32> to vector<5x1xf32>
    %cst_22 = arith.constant 3.200000e+01 : f32
    %24 = vector.broadcast %cst_22 : f32 to vector<5x1xf32>
    %25 = arith.divf %23, %24 : vector<5x1xf32>
    %26 = vector.broadcast %18 : vector<5x1xf32> to vector<5x32xf32>
    %27 = arith.subf %12, %26 : vector<5x32xf32>
    %cst_23 = arith.constant 9.99999974E-6 : f32
    %28 = vector.broadcast %cst_23 : f32 to vector<5x1xf32>
    %29 = arith.addf %25, %28 : vector<5x1xf32>
    %30 = math.rsqrt %29 : vector<5x1xf32>
    %31 = vector.broadcast %30 : vector<5x1xf32> to vector<5x32xf32>
    %32 = arith.mulf %27, %31 : vector<5x32xf32>
    %33 = vector.broadcast %13 : vector<1x32xf32> to vector<5x32xf32>
    %34 = arith.mulf %32, %33 : vector<5x32xf32>
    %35 = vector.broadcast %14 : vector<1x32xf32> to vector<5x32xf32>
    %36 = arith.addf %34, %35 : vector<5x32xf32>
    %c0_24 = arith.constant 0 : index
    %c0_25 = arith.constant 0 : index
    %c0_26 = arith.constant 0 : index
    %37 = vector.load %arg7[%c0_24, %c0_25, %c0_26] : memref<1x5x32xf32, #tpu.memory_space<vmem>>, vector<1x5x32xf32>
    %38 = vector.shape_cast %37 : vector<1x5x32xf32> to vector<5x32xf32>
    %39 = vector.shape_cast %36 : vector<5x32xf32> to vector<1x5x32xf32>
    tpu.vector_store %arg7[%c0_24, %c0_25, %c0_26], %39 {strides = array<i32>} : memref<1x5x32xf32, #tpu.memory_space<vmem>>, vector<1x5x32xf32>,
    return
  }
  func.func @transform_0(%arg0: i32) -> (i32, i32, i32) {
    %c0_i32 = arith.constant 0 : i32
    %c0_i32_0 = arith.constant 0 : i32
    %c0_i32_1 = arith.constant 0 : i32
    return %arg0, %c0_i32, %c0_i32_0 : i32, i32, i32
  }
  func.func @transform_1(%arg0: i32) -> (i32, i32) {
    %c0_i32 = arith.constant 0 : i32
    %c0_i32_0 = arith.constant 0 : i32
    %c0_i32_1 = arith.constant 0 : i32
    return %c0_i32, %c0_i32_0 : i32, i32
  }
  func.func @transform_2(%arg0: i32) -> (i32, i32) {
    %c0_i32 = arith.constant 0 : i32
    %c0_i32_0 = arith.constant 0 : i32
    %c0_i32_1 = arith.constant 0 : i32
    return %c0_i32, %c0_i32_0 : i32, i32
  }
  func.func @transform_3(%arg0: i32) -> (i32, i32) {
    %c0_i32 = arith.constant 0 : i32
    %c0_i32_0 = arith.constant 0 : i32
    %c0_i32_1 = arith.constant 0 : i32
    return %c0_i32, %c0_i32_0 : i32, i32
  }
  func.func @transform_4(%arg0: i32) -> (i32, i32) {
    %c0_i32 = arith.constant 0 : i32
    %c0_i32_0 = arith.constant 0 : i32
    %c0_i32_1 = arith.constant 0 : i32
    return %c0_i32, %c0_i32_0 : i32, i32
  }
  func.func @transform_5(%arg0: i32) -> (i32, i32) {
    %c0_i32 = arith.constant 0 : i32
    %c0_i32_0 = arith.constant 0 : i32
    %c0_i32_1 = arith.constant 0 : i32
    return %c0_i32, %c0_i32_0 : i32, i32
  }
  func.func @transform_6(%arg0: i32) -> (i32, i32, i32) {
    %c0_i32 = arith.constant 0 : i32
    %c0_i32_0 = arith.constant 0 : i32
    %c0_i32_1 = arith.constant 0 : i32
    return %arg0, %c0_i32, %c0_i32_0 : i32, i32, i32
  }
}

</mosaic_0001>

<bundles_post_ra>
// kernel: tpu_custom_call.1
= control target key start
LH: loop header
LB: loop body
LE: loop exit
PB: predicated region body
PF: predicated region fallthrough
CT: control target
= control target key end

     0   :  { %s585_s21 = smov 0   ;;  %s663_s0 = inlined_call_operand.vmem [shape: f32[2,4,192], index: 0, kind: input, shape index: {}]   ;;  %s664_s1 = inlined_call_operand.vmem [shape: bf16[192,32], index: 1, kind: input, shape index: {}]   ;;  %s665_s2 = inlined_call_operand.vmem [shape: f32[1,32], index: 2, kind: input, shape index: {}]   ;;  %s666_s3 = inlined_call_operand.vmem [shape: f32[5,32], index: 3, kind: input, shape index: {}]   ;;  %s667_s4 = inlined_call_operand.vmem [shape: f32[1,32], index: 4, kind: input, shape index: {}]   ;;  %s668_s5 = inlined_call_operand.vmem [shape: f32[1,32], index: 5, kind: input, shape index: {}]   ;;  %s669_s6 = inlined_call_operand.vmem [shape: f32[2,5,32], index: 6, kind: output, shape index: {}]  }
   0x1 LB: > { %s491_s22 = sadd.s32 4294967295, %s547_s21   ;;  %p495_p0 = scmp.ge.s32.totalorder %s547_s21, 1  ;;  %s547_s21 = sphi %s585_s21, %s16_s21  }
   0x2   : > { %p212_p1 = scmp.lt.s32.totalorder %s547_s21, 3 }
   0x4   : > { %p213_p2 = pnand %p495_p0, %p212_p1 }
   0x5   : > { %v526_v0 = vld [vmem:[%s664_s1] sm:$0xff] (!%p213_p2)   ;;  %v549_v1 = vmov (!%p213_p2), 0   ;;  %p241_p3 = scmp.lt.s32.totalorder (!%p213_p2), %s491_s22, 1  ;;  %v527_v2 = vld [vmem:[%s664_s1 + $0x8] sm:$0xff] (!%p213_p2)   ;;  %v528_v3 = vld [vmem:[%s664_s1 + $0x10] sm:$0xff] (!%p213_p2)   ;;  %vm359_vm0 = vcmask (!%p213_p2), 523264  }
   0x6   : > { %216 = sbr.rel (%p213_p2) target bundleno = 590 (0x24e), region = 44  ;;  %363 = vmatprep.subr.bf16.mxu0 (!%p213_p2), %v549_v1  ;;  %v529_v4 = vld [vmem:[%s664_s1 + $0x18] sm:$0xff] (!%p213_p2)   ;;  %v530_v7 = vld [vmem:[%s664_s1 + $0x20] sm:$0xff] (!%p213_p2)   ;;  %v531_v9 = vld [vmem:[%s664_s1 + $0x28] sm:$0xff] (!%p213_p2)   ;;  %vm284_vm1 = vcmask (!%p213_p2), 253952   ;;  %vm403_vm2 = vcmask (!%p213_p2), 257024  }
   0x7   : > { %364 = vmatpush1.bf16.msra.mxu0 (!%p213_p2), %v526_v0  ;;  %v532_v10 = vld [vmem:[%s664_s1 + $0x30] sm:$0xff] (!%p213_p2)   ;;  %v533_v11 = vld [vmem:[%s664_s1 + $0x38] sm:$0xff] (!%p213_p2)   ;;  %v534_v12 = vld [vmem:[%s664_s1 + $0x40] sm:$0xff] (!%p213_p2)   ;;  %vm408_vm3 = vcmask (!%p213_p2), 258048  }
   0x8   : > { %365 = vmatprep.subr.bf16.mxu0 (!%p213_p2), %v549_v1  ;;  %v535_v13 = vld [vmem:[%s664_s1 + $0x48] sm:$0xff] (!%p213_p2)   ;;  %v536_v14 = vld [vmem:[%s664_s1 + $0x50] sm:$0xff] (!%p213_p2)   ;;  %v537_v15 = vld [vmem:[%s664_s1 + $0x58] sm:$0xff] (!%p213_p2)  }
   0x9   : > { %v281_v17 = vld [vmem:[%s665_s2] sm:$0x1] (!%p213_p2)  ;;  %v286_v20 = vld [vmem:[%s666_s3 + $0x1] sm:$0xf] (!%p213_p2) }
   0xa   : > { %v282_v18 = vld [vmem:[%s666_s3] sm:$0x1] (!%p213_p2) }
   0xb   : > { %366 = vmatpush1.bf16.msra.mxu0 (!%p213_p2), %v527_v2  ;;  %v283_v19 = vadd.f32 (!%p213_p2), %v282_v18, %v281_v17  ;;  %v512_v37 = vld [vmem:[%s667_s4] ss:$0 sm:$0xff] (!%p213_p2) }
   0xc   : > { %367 = vmatprep.subr.bf16.mxu0 (!%p213_p2), %v549_v1  ;;  %v513_v39 = vld [vmem:[%s668_s5] ss:$0 sm:$0xff] (!%p213_p2) }
   0xd   : > { %s671_s22 = smov (!%p241_p3, %s491_s22), 1  ;;  %285 = vst.msk [vmem:[#allocation2] sm:$0x1] %vm284_vm1, %v283_v19 }
   0xe   : > { %s516_s29 = sshll.u32 %s671_s22, 3 }
   0xf   : > { %s245_s8 = scalar_lea.vmem %s663_s0, %s516_s29  ;;  %368 = vmatpush1.bf16.msra.mxu0 %v528_v3  ;;  %s249_s18 = scalar_lea.vmem %s669_s6, %s516_s29 }
  0x10   : > { %369 = vmatprep.subr.bf16.mxu0 %v549_v1  ;;  %v251_v5 = vld [vmem:[%s245_s8] sm:$0xff] }
  0x11   : > { %v253_v6 = vcombine.high %v251_v5, %v251_v5  ;;  %v255_v16 = vpack.c.bf16 %v251_v5, %v251_v5 }
  0x13   : > { %370 = vmatpush1.bf16.msra.mxu0 %v529_v4  ;;  %v256_v8 = vpack.c.bf16 %v253_v6, %v253_v6 }
  0x14   : > { %371 = vmatprep.subr.bf16.mxu0 %v549_v1 }
  0x15   : > { %511 = vmatprep.mubr.msk.bf16.mxu0 %vm359_vm0, %v256_v8 }
  0x17   : > { %372 = vmatpush1.bf16.msra.mxu0 %v530_v7 }
  0x18   : > { %373 = vmatprep.subr.bf16.mxu0 %v549_v1 }
  0x1b   : > { %374 = vmatpush1.bf16.msra.mxu0 %v531_v9 }
  0x1c   : > { %375 = vmatprep.subr.bf16.mxu0 %v549_v1 }
  0x1f   : > { %376 = vmatpush1.bf16.msra.mxu0 %v532_v10 }
  0x20   : > { %377 = vmatprep.subr.bf16.mxu0 %v549_v1 }
  0x23   : > { %378 = vmatpush1.bf16.msra.mxu0 %v533_v11 }
  0x24   : > { %379 = vmatprep.subr.bf16.mxu0 %v549_v1 }
  0x27   : > { %380 = vmatpush1.bf16.msra.mxu0 %v534_v12 }
  0x28   : > { %381 = vmatprep.subr.bf16.mxu0 %v549_v1 }
  0x2b   : > { %382 = vmatpush1.bf16.msra.mxu0 %v535_v13 }
  0x2c   : > { %383 = vmatprep.subr.bf16.mxu0 %v549_v1 }
  0x2f   : > { %384 = vmatpush1.bf16.msra.mxu0 %v536_v14 }
  0x30   : > { %385 = vmatprep.subr.bf16.mxu0 %v549_v1 }
  0x33   : > { %386 = vmatpush1.bf16.msra.mxu0 %v537_v15 }
  0x36   : > { %396 = vmatmul.mubr.bf16.vlgmr.msra.gmra.mrb[0].mxu0 %v255_v16 }
 0x109   : > { %v397_v21 = vpop.f32.mrb[0].mxu0 }
 0x10a   : > { %v398_v22 = vadd.f32 %v397_v21, %v286_v20  ;;  %v399_v23 = vpop.f32.mrb[1].mxu0 }
 0x10b   : > { %v400_v24 = vpop.f32.mrb[2].mxu0 }
 0x10c   : > { %404 = vst.msk [vmem:[#allocation2 + $0x1] sm:$0xf] %vm403_vm2, %v398_v22  ;;  %v401_v25 = vpop.f32.mrb[3].mxu0 }
 0x113   : > { %v405_v26 = vld [vmem:[#allocation2] sm:$0x1f] }
 0x114   : > { %v409_v27 = vsel %vm408_vm3, %v405_v26, 0.0 }
 0x115   : > { %410 = vadd.xlane.f32.xlu0 %v409_v27 }
 0x1a2   : > { %v411_v28 = vpop.xlane.xlu0 %410 }
 0x1a3   : > { %v413_v29 = vmul.f32 0.03125, %v411_v28 }
 0x1a5   : > { %v414_v30 = vsub.f32 %v405_v26, %v413_v29 }
 0x1a7   : > { %v415_v31 = vmul.f32 %v414_v30, %v414_v30 }
 0x1a9   : > { %v416_v32 = vsel %vm408_vm3, %v415_v31, 0.0 }
 0x1aa   : > { %417 = vadd.xlane.f32.xlu0 %v416_v32 }
 0x237   : > { %v418_v33 = vpop.xlane.xlu0 %417 }
 0x238   : > { %v419_v34 = vmul.f32 0.03125, %v418_v33 }
 0x23a   : > { %v420_v35 = vadd.f32 1e-05, %v419_v34 }
 0x23c   : > { %539 = vrsqrt.f32 %v420_v35 }
 0x246   : > { %v540_v36 = vpop.eup %539 }
 0x247   : > { %v422_v38 = vmul.f32 %v540_v36, %v414_v30 }
 0x249   : > { %v429_v40 = vmul.f32 %v512_v37, %v422_v38 }
 0x24b   : > { %v436_v41 = vadd.f32 %v513_v39, %v429_v40 }
 0x24d   : > { %437 = vst.msk [vmem:[%s249_s18] sm:$0x1f] %vm408_vm3, %v436_v41 }
 0x24e PF: > { %s16_s21 = sadd.s32 1, %s547_s21  }
 0x24f   : > { %p13_p4 = scmp.ge.s32.totalorder %s16_s21, 4  }
 0x251   :  { %15 = sbr.rel (!%p13_p4) target bundleno = 1 (0x1), region = 74 }

</bundles_post_ra>
